<compile_context>
chip_gen: v7x
topology: tpu7x:2x2x1
jax: 0.10.0
libtpu: 0.0.40
codegen_flags: <defaults>
</compile_context>

<pallas_src>
import math
import jax
import jax.numpy as jnp
from jax.experimental import pallas as pl
from jax.experimental.pallas import tpu as pltpu


def _round_up(v, m):
    return pl.cdiv(v, m) * m


def mlp_kernel(x_ref, w1_ref, b1_ref, w2_ref, b2_ref, x1_ref, x2_ref):
    # fc1 + bias + ReLU: bf16 operands, f32 accumulation on the MXU.
    x = x_ref[...]                                      # (tile_rows, Dp) bf16
    h = jnp.dot(x, w1_ref[...], preferred_element_type=jnp.float32)
    h = jnp.maximum(h + b1_ref[...], 0.0)               # (tile_rows, Hp) f32
    x1_ref[...] = h.astype(x1_ref.dtype)
    # fc2: re-cast activation to bf16 for the MXU, accumulate in f32.
    x2_ref[...] = (
        jnp.dot(h.astype(jnp.bfloat16), w2_ref[...],
                preferred_element_type=jnp.float32) + b2_ref[...]
    ).astype(x2_ref.dtype)


def mlp_forward(x, w1, b1, w2, b2, *, tile_rows=256):
    """x: [N, D]; w1: [D, H]; b1: [1, H]; w2: [H, C]; b2: [1, C].

    Returns (x1, x2) = (relu(x @ w1 + b1), x1 @ w2 + b2), both float32.
    """
    N, D = x.shape
    H = w1.shape[1]
    C = w2.shape[1]

    # Lane-dense padding: last dims to multiples of 128, rows to tile_rows.
    Dp = _round_up(D, 128)
    Hp = _round_up(H, 128)
    Cp = _round_up(C, 128)
    Np = _round_up(N, tile_rows)

    # Zero padding keeps the math exact: padded input columns multiply zero
    # weight rows; padded hidden columns get relu(0 + 0) = 0 and feed zero
    # rows of w2; padded class columns are sliced away at the end.
    xp = jnp.zeros((Np, Dp), jnp.bfloat16).at[:N, :D].set(x.astype(jnp.bfloat16))
    w1p = jnp.zeros((Dp, Hp), jnp.bfloat16).at[:D, :H].set(w1.astype(jnp.bfloat16))
    b1p = jnp.zeros((1, Hp), jnp.float32).at[:, :H].set(b1.astype(jnp.float32))
    w2p = jnp.zeros((Hp, Cp), jnp.bfloat16).at[:H, :C].set(w2.astype(jnp.bfloat16))
    b2p = jnp.zeros((1, Cp), jnp.float32).at[:, :C].set(b2.astype(jnp.float32))

    grid = (Np // tile_rows,)

    x1p, x2p = pl.pallas_call(
        mlp_kernel,
        out_shape=(
            jax.ShapeDtypeStruct((Np, Hp), jnp.float32),
            jax.ShapeDtypeStruct((Np, Cp), jnp.float32),
        ),
        grid=grid,
        in_specs=[
            pl.BlockSpec((tile_rows, Dp), lambda i: (i, 0)),  # x row tile
            pl.BlockSpec((Dp, Hp), lambda i: (0, 0)),         # W1 (resident)
            pl.BlockSpec((1, Hp), lambda i: (0, 0)),          # b1
            pl.BlockSpec((Hp, Cp), lambda i: (0, 0)),         # W2 (resident)
            pl.BlockSpec((1, Cp), lambda i: (0, 0)),          # b2
        ],
        out_specs=(
            pl.BlockSpec((tile_rows, Hp), lambda i: (i, 0)),  # x1 row tile
            pl.BlockSpec((tile_rows, Cp), lambda i: (i, 0)),  # x2 row tile
        ),
        compiler_params=pltpu.CompilerParams(
            dimension_semantics=("parallel",),
        ),
    )(xp, w1p, b1p, w2p, b2p)

    return x1p[:N, :H], x2p[:N, :C]


def init_linear_params(key, in_dim, out_dim):
    """Deterministic init matching nn.Linear's uniform(-1/sqrt(in), 1/sqrt(in)).

    Returns weight already transposed to [in, out] and bias as [1, out]."""
    kw, kb = jax.random.split(key)
    bound = 1.0 / math.sqrt(in_dim)
    w = jax.random.uniform(kw, (in_dim, out_dim), jnp.float32, -bound, bound)
    b = jax.random.uniform(kb, (1, out_dim), jnp.float32, -bound, bound)
    return w, b


if __name__ == "__main__":
    # Small shapes consistent with the module (node-feature MLP):
    #   args.input_dim=16, args.hidden_dim=32, args.num_classes=4, N=512 rows.
    # N=512 with tile_rows=256 gives a 2-step parallel grid (shardable across
    # both v7x TensorCores).
    N, INPUT_DIM, HIDDEN_DIM, NUM_CLASSES = 512, 16, 32, 4

    root = jax.random.PRNGKey(0)
    kx, k1, k2 = jax.random.split(root, 3)

    x = jax.random.normal(kx, (N, INPUT_DIM), jnp.float32)
    w1, b1 = init_linear_params(k1, INPUT_DIM, HIDDEN_DIM)
    w2, b2 = init_linear_params(k2, HIDDEN_DIM, NUM_CLASSES)

    x1, x2 = mlp_forward(x, w1, b1, w2, b2, tile_rows=256)
    jax.block_until_ready((x1, x2))

    assert x1.shape == (N, HIDDEN_DIM) and x1.dtype == jnp.float32
    assert x2.shape == (N, NUM_CLASSES) and x2.dtype == jnp.float32

    # Reference check in plain JAX using the same bf16-in / f32-accum recipe
    # (eval-mode dropout == identity).
    xb = x.astype(jnp.bfloat16)
    w1b = w1.astype(jnp.bfloat16)
    w2b = w2.astype(jnp.bfloat16)
    x1_ref = jnp.maximum(
        jnp.dot(xb, w1b, preferred_element_type=jnp.float32) + b1, 0.0)
    x2_ref = jnp.dot(x1_ref.astype(jnp.bfloat16), w2b,
                     preferred_element_type=jnp.float32) + b2

    assert jnp.allclose(x1, x1_ref, atol=1e-2, rtol=1e-2)
    assert jnp.allclose(x2, x2_ref, atol=1e-2, rtol=1e-2)

    print("KERNEL_OK")
</pallas_src>

<mosaic_0001>
module attributes {stable_mosaic.version = 11 : i64} {
  func.func @mlp_kernel(%arg0: i32, %arg1: memref<256x128xbf16, #tpu.memory_space<vmem>>, %arg2: memref<128x128xbf16, #tpu.memory_space<vmem>>, %arg3: memref<1x128xf32, #tpu.memory_space<vmem>>, %arg4: memref<128x128xbf16, #tpu.memory_space<vmem>>, %arg5: memref<1x128xf32, #tpu.memory_space<vmem>>, %arg6: memref<256x128xf32, #tpu.memory_space<vmem>>, %arg7: memref<256x128xf32, #tpu.memory_space<vmem>>) attributes {dimension_semantics = [#tpu.dimension_semantics<parallel>], iteration_bounds = array<i64: 2>, scalar_prefetch = 0 : i64, scratch_operands = 0 : i64, tpu.core_type = #tpu.core_type<tc>, window_params = [{transform_indices = @transform_0, window_bounds = array<i64: 256, 128>}, {pipeline_mode = #tpu.pipeline_mode<synchronous>, transform_indices = @transform_1, window_bounds = array<i64: 128, 128>}, {pipeline_mode = #tpu.pipeline_mode<synchronous>, transform_indices = @transform_2, window_bounds = array<i64: 1, 128>}, {pipeline_mode = #tpu.pipeline_mode<synchronous>, transform_indices = @transform_3, window_bounds = array<i64: 128, 128>}, {pipeline_mode = #tpu.pipeline_mode<synchronous>, transform_indices = @transform_4, window_bounds = array<i64: 1, 128>}, {transform_indices = @transform_5, window_bounds = array<i64: 256, 128>}, {transform_indices = @transform_6, window_bounds = array<i64: 256, 128>}]} {
    %c0 = arith.constant 0 : index
    %c0_0 = arith.constant 0 : index
    %0 = vector.load %arg1[%c0, %c0_0] : memref<256x128xbf16, #tpu.memory_space<vmem>>, vector<256x128xbf16>
    %c0_1 = arith.constant 0 : index
    %c0_2 = arith.constant 0 : index
    %1 = vector.load %arg2[%c0_1, %c0_2] : memref<128x128xbf16, #tpu.memory_space<vmem>>, vector<128x128xbf16>
    %cst = arith.constant dense<0.000000e+00> : vector<256x128xf32>
    %2 = tpu.matmul %0, %1, %cst {dimension_numbers = #tpu.dot_dimension_numbers<[1], [0], [0], [1], [0, 0, 1, 1], [], []>} : vector<256x128xbf16>, vector<128x128xbf16>, vector<256x128xf32> -> vector<256x128xf32>
    %c0_3 = arith.constant 0 : index
    %c0_4 = arith.constant 0 : index
    %3 = vector.load %arg3[%c0_3, %c0_4] : memref<1x128xf32, #tpu.memory_space<vmem>>, vector<1x128xf32>
    %4 = vector.broadcast %3 : vector<1x128xf32> to vector<256x128xf32>
    %5 = arith.addf %2, %4 : vector<256x128xf32>
    %cst_5 = arith.constant 0.000000e+00 : f32
    %6 = vector.broadcast %cst_5 : f32 to vector<256x128xf32>
    %7 = arith.maximumf %5, %6 : vector<256x128xf32>
    %c0_6 = arith.constant 0 : index
    %c0_7 = arith.constant 0 : index
    %8 = vector.load %arg6[%c0_6, %c0_7] : memref<256x128xf32, #tpu.memory_space<vmem>>, vector<256x128xf32>
    tpu.vector_store %arg6[%c0_6, %c0_7], %7 {strides = array<i32>} : memref<256x128xf32, #tpu.memory_space<vmem>>, vector<256x128xf32>,
    %9 = arith.truncf %7 : vector<256x128xf32> to vector<256x128xbf16>
    %c0_8 = arith.constant 0 : index
    %c0_9 = arith.constant 0 : index
    %10 = vector.load %arg4[%c0_8, %c0_9] : memref<128x128xbf16, #tpu.memory_space<vmem>>, vector<128x128xbf16>
    %cst_10 = arith.constant dense<0.000000e+00> : vector<256x128xf32>
    %11 = tpu.matmul %9, %10, %cst_10 {dimension_numbers = #tpu.dot_dimension_numbers<[1], [0], [0], [1], [0, 0, 1, 1], [], []>} : vector<256x128xbf16>, vector<128x128xbf16>, vector<256x128xf32> -> vector<256x128xf32>
    %c0_11 = arith.constant 0 : index
    %c0_12 = arith.constant 0 : index
    %12 = vector.load %arg5[%c0_11, %c0_12] : memref<1x128xf32, #tpu.memory_space<vmem>>, vector<1x128xf32>
    %13 = vector.broadcast %12 : vector<1x128xf32> to vector<256x128xf32>
    %14 = arith.addf %11, %13 : vector<256x128xf32>
    %c0_13 = arith.constant 0 : index
    %c0_14 = arith.constant 0 : index
    %15 = vector.load %arg7[%c0_13, %c0_14] : memref<256x128xf32, #tpu.memory_space<vmem>>, vector<256x128xf32>
    tpu.vector_store %arg7[%c0_13, %c0_14], %14 {strides = array<i32>} : memref<256x128xf32, #tpu.memory_space<vmem>>, vector<256x128xf32>,
    return
  }
  func.func @transform_0(%arg0: i32) -> (i32, i32) {
    %c0_i32 = arith.constant 0 : i32
    %c0_i32_0 = arith.constant 0 : i32
    return %arg0, %c0_i32 : i32, i32
  }
  func.func @transform_1(%arg0: i32) -> (i32, i32) {
    %c0_i32 = arith.constant 0 : i32
    %c0_i32_0 = arith.constant 0 : i32
    %c0_i32_1 = arith.constant 0 : i32
    return %c0_i32, %c0_i32_0 : i32, i32
  }
  func.func @transform_2(%arg0: i32) -> (i32, i32) {
    %c0_i32 = arith.constant 0 : i32
    %c0_i32_0 = arith.constant 0 : i32
    %c0_i32_1 = arith.constant 0 : i32
    return %c0_i32, %c0_i32_0 : i32, i32
  }
  func.func @transform_3(%arg0: i32) -> (i32, i32) {
    %c0_i32 = arith.constant 0 : i32
    %c0_i32_0 = arith.constant 0 : i32
    %c0_i32_1 = arith.constant 0 : i32
    return %c0_i32, %c0_i32_0 : i32, i32
  }
  func.func @transform_4(%arg0: i32) -> (i32, i32) {
    %c0_i32 = arith.constant 0 : i32
    %c0_i32_0 = arith.constant 0 : i32
    %c0_i32_1 = arith.constant 0 : i32
    return %c0_i32, %c0_i32_0 : i32, i32
  }
  func.func @transform_5(%arg0: i32) -> (i32, i32) {
    %c0_i32 = arith.constant 0 : i32
    %c0_i32_0 = arith.constant 0 : i32
    return %arg0, %c0_i32 : i32, i32
  }
  func.func @transform_6(%arg0: i32) -> (i32, i32) {
    %c0_i32 = arith.constant 0 : i32
    %c0_i32_0 = arith.constant 0 : i32
    return %arg0, %c0_i32 : i32, i32
  }
}

</mosaic_0001>

<bundles_post_ra>
// kernel: tpu_custom_call.1
= control target key start
LH: loop header
LB: loop body
LE: loop exit
PB: predicated region body
PF: predicated region fallthrough
CT: control target
= control target key end

     0   :  { %12 = vsyncpa [#allocation3], 0  ;;  %s2173_s0 = inlined_call_operand.hbm [shape: bf16[512,128], index: 0, kind: input, shape index: {}]   ;;  %s2174_s1 = inlined_call_operand.hbm [shape: bf16[128,128], index: 1, kind: input, shape index: {}]   ;;  %s2175_s2 = inlined_call_operand.vmem [shape: f32[1,128], index: 2, kind: input, shape index: {}]   ;;  %s2176_s3 = inlined_call_operand.hbm [shape: bf16[128,128], index: 3, kind: input, shape index: {}]   ;;  %s2177_s4 = inlined_call_operand.vmem [shape: f32[1,128], index: 4, kind: input, shape index: {}]   ;;  %s2178_s5 = inlined_call_operand.hbm [shape: f32[512,128], index: 5, kind: output, shape index: {0}]   ;;  %s2179_s6 = inlined_call_operand.hbm [shape: f32[512,128], index: 6, kind: output, shape index: {1}]  }
   0x1   :  { %14 = vsyncpa [#allocation3 + $0x1], 0 }
   0x2   :  { %15 = vsyncpa [#allocation6], 0 }
   0x3   :  { %16 = vsyncpa [#allocation4], 0 }
   0x4   :  { %18 = vsyncpa [#allocation4 + $0x1], 0 }
   0x5   :  { %19 = vsyncpa [#allocation10], 0 }
   0x6   :  { %21 = vsyncpa [#allocation10 + $0x1], 0  ;;  %s1722_s21 = smov 0   ;;  %s1724_s22 = smov 0  }
   0x7   :  { %s1726_s23 = smov 0   ;;  %s1728_s24 = smov 0  }
   0x8 LB: > { %s1743_s25 = sadd.s32 4294967295, %s1676_s24   ;;  %s1177_s26 = sadd.s32 4294967294, %s1676_s24   ;;  %s1676_s24 = sphi %s1728_s24, %s2199_s24   ;;  %s1672_s23 = sphi %s1726_s23, %s2198_s23   ;;  %s1668_s22 = sphi %s1724_s22, %s2197_s22   ;;  %s1664_s21 = sphi %s1722_s21, %s2196_s21  }
   0x9   : > { %p47_p0 = scmp.ne.s32.totalorder %s1668_s22, %s1664_s21  ;;  %p2180_p1 = scmp.eq.s32.totalorder %s1743_s25, 0 }
   0xa   : > { %p161_p3 = scmp.eq.s32.totalorder %s1177_s26, 1  ;;  %p1178_p5 = scmp.ge.s32.totalorder %s1676_s24, 1 }
   0xb   : > { %p1752_p4 = por %p2180_p1, %p47_p0  ;;  %p194_p7 = scmp.lt.s32.totalorder %s1676_s24, 3 }
   0xc   : > { %p1757_p6 = por %p161_p3, %p47_p0  ;;  %s1678_s30 = smov [#allocation5]  }
   0xd   : > { %s2183_s27 = scalar_select %p1752_p4, 1, 0 }
   0xe   : > { %s2184_s28 = scalar_select %p1757_p6, 1, 0 }
   0xf   : > { %p1762_p8 = pnand %p1178_p5, %p194_p7  ;;  %s206_s7 = sshll.u32 %s1678_s30, 4  ;;  %s1766_s7 = int_to_ptr.vmem [resolvable:$true] %s206_s7 }
  0x10   : > { %s1679_s9 = smov [#allocation7]   ;;  %s1488_s13 = scalar_lea.hbm %s2174_s1, 1024 }
  0x11   : > { %p1394_p9 = pneg %p1762_p8  ;;  %s222_s10 = sshll.u32 %s1679_s9, 4  ;;  %s1777_s10 = int_to_ptr.vmem [resolvable:$true] %s222_s10 }
  0x12   : > { %p1489_p12 = scmp.ne.s32.totalorder %s2174_s1, %s1488_s13  ;;  %p1495_p5 = scmp.lt.u32.totalorder %s1488_s13, %s2174_s1 }
  0x13   : > { %p1773_p11 = pnand %p1394_p9, %p2180_p1 }
  0x15   : > { %p1490_p13 = pneg %p1773_p11 }
  0x17   : > { %p1491_p0 = pnand %p1490_p13, %p1489_p12 }
  0x19   : > { %p1492_p3 = pneg %p1491_p0 }
  0x1b   : > { %p1497_p7 = pnand %p1495_p5, %p1492_p3 }
  0x1d   : > { %1500 = shalt.err (!%p1497_p7)
}
  0x1e   : > { %s1501_s18 = scalar_lea.vmem %s1766_s7, 1024  ;;  %p1509_p2 = scmp.lt.s32.totalorder %s1766_s7, %s1766_s7 }
  0x1f   : > { %p1502_p9 = scmp.ne.s32.totalorder %s1766_s7, %s1501_s18  ;;  %p1510_p12 = scmp.lt.s32.totalorder %s1501_s18, %s1501_s18 }
  0x21   : > { %p1504_p10 = pnand %p1502_p9, %p1490_p13  ;;  %p1511_p0 = por %p1510_p12, %p1509_p2 }
  0x23   : > { %p1505_p1 = pneg %p1504_p10 }
  0x25   : > { %p1512_p6 = pnand %p1511_p0, %p1505_p1 }
  0x27   : > { %1515 = shalt.err (!%p1512_p6)
}
  0x28   : > { %s1680_s19 = smov 64   ;;  %s1681_s20 = smov 4  }
  0x29   : > { %1397 = dma.hbm_to_vmem [thread:$0]  (!%p1773_p11), %s2174_s1, 1024, %s1766_s7, [#allocation6], %s1680_s19, %s1680_s19, %s1681_s20  }
  0x2a   : > { %s1516_s12 = scalar_lea.hbm %s2176_s3, 1024 }
  0x2b   : > { %p1517_p1 = scmp.ne.s32.totalorder %s2176_s3, %s1516_s12  ;;  %p1523_p10 = scmp.lt.u32.totalorder %s1516_s12, %s2176_s3 }
  0x2d   : > { %p1519_p2 = pnand %p1517_p1, %p1490_p13 }
  0x2f   : > { %p1520_p6 = pneg %p1519_p2 }
  0x31   : > { %p1525_p3 = pnand %p1523_p10, %p1520_p6 }
  0x33   : > { %1528 = shalt.err (!%p1525_p3)
}
  0x34   : > { %s1529_s7 = scalar_lea.vmem %s1777_s10, 1024  ;;  %p1537_p12 = scmp.lt.s32.totalorder %s1777_s10, %s1777_s10 }
  0x35   : > { %p1530_p5 = scmp.ne.s32.totalorder %s1777_s10, %s1529_s7  ;;  %p1538_p0 = scmp.lt.s32.totalorder %s1529_s7, %s1529_s7 }
  0x37   : > { %p1532_p7 = pnand %p1530_p5, %p1490_p13  ;;  %p1539_p1 = por %p1538_p0, %p1537_p12 }
  0x39   : > { %p1533_p9 = pneg %p1532_p7 }
  0x3b   : > { %p1540_p2 = pnand %p1539_p1, %p1533_p9 }
  0x3d   : > { %1543 = shalt.err (!%p1540_p2)
}
  0x3e   : > { %1400 = dma.hbm_to_vmem [thread:$0]  (!%p1773_p11), %s2176_s3, 1024, %s1777_s10, [#allocation6], %s1680_s19, %s1680_s19, %s1681_s20  }
  0x3f   : > { %s1838_s8 = sadd.s32 1, %s1676_s24   ;;  %s34_s26 = sadd.s32 1, %s1672_s23 }
  0x40   : > { %s31_s30 = ssub.s32 %s1676_s24, %s1838_s8  ;;  %p41_p13 = scmp.ne.s32.totalorder %s1672_s23, %s1668_s22 }
  0x41   : > { %p32_p6 = scmp.eq.s32.totalorder %s31_s30, 0  ;;  %p42_p10 = scmp.eq.s32.totalorder %s1676_s24, 0 }
  0x42   : > { %p2187_p3 = scmp.eq.s32.totalorder %s1743_s25, 1  ;;  %p1414_p7 = scmp.lt.s32.totalorder %s1676_s24, 2 }
  0x43   : > { %s1854_s11 = scalar_select %p32_p6, %s1672_s23, %s34_s26  }
  0x44   : > { %p1848_p5 = por %p2187_p3, %p41_p13  ;;  %p43_p9 = por %p42_p10, %p41_p13 }
  0x45   : > { %s239_s12 = sand.u32 1, %s1672_s23   ;;  %s1233_s10 = sshll.u32 %s1676_s24, 11 }
  0x46   : > { %s2188_s9 = scalar_select %p1848_p5, 1, 0 }
  0x47   : > { %s1182_s13 = sshll.u32 %s239_s12, 7  ;;  %s1861_s16 = scalar_lea.hbm %s2173_s0, %s1233_s10 }
  0x48   : > { %s243_s7 = scalar_lea.vmem [#allocation2], %s1182_s13  ;;  %p1865_p11 = pnand %p1414_p7, %p43_p9 }
  0x49   : > { %s250_s17 = sshll.u32 %s243_s7, 4  ;;  %s1869_s26 = scalar_lea.sflag [#allocation3], %s239_s12  ;;  %s1863_s17 = int_to_ptr.vmem [resolvable:$true] %s250_s17 }
  0x4a   : > { %s1544_s30 = scalar_lea.hbm %s1861_s16, 2048  ;;  %p1546_p0 = pneg %p1865_p11 }
  0x4b   : > { %p1545_p12 = scmp.ne.s32.totalorder %s1861_s16, %s1544_s30  ;;  %s1549_s14 = scalar_lea.hbm %s2173_s0, 4096 }
  0x4c   : > { %p1550_p13 = scmp.lt.u32.totalorder %s1861_s16, %s2173_s0  ;;  %p1551_p6 = scmp.lt.u32.totalorder %s1549_s14, %s1544_s30 }
  0x4d   : > { %p1547_p1 = pnand %p1546_p0, %p1545_p12  ;;  %p1553_p3 = scmp.lt.u32.totalorder %s1544_s30, %s1861_s16 }
  0x4e   : > { %p1552_p10 = por %p1551_p6, %p1550_p13 }
  0x4f   : > { %p1548_p2 = pneg %p1547_p1 }
  0x50   : > { %p1554_p7 = por %p1553_p3, %p1552_p10 }
  0x52   : > { %p1555_p9 = pnand %p1554_p7, %p1548_p2 }
  0x54   : > { %1558 = shalt.err (!%p1555_p9)
}
  0x55   : > { %s1559_s12 = scalar_lea.vmem %s1863_s17, 2048  ;;  %s1682_s13 = smov [#allocation2]  }
  0x56   : > { %p1560_p12 = scmp.ne.s32.totalorder %s1863_s17, %s1559_s12  ;;  %s1564_s10 = sshll.u32 %s1682_s13, 4  ;;  %s1565_s10 = int_to_ptr.vmem [resolvable:$false] %s1564_s10 }
  0x57   : > { %s1566_s15 = scalar_lea.vmem %s1565_s10, 4096  ;;  %p1567_p4 = scmp.lt.s32.totalorder %s1863_s17, %s1565_s10 }
  0x58   : > { %p1562_p1 = pnand %p1560_p12, %p1546_p0  ;;  %p1568_p13 = scmp.lt.s32.totalorder %s1566_s15, %s1559_s12 }
  0x5a   : > { %p1563_p5 = pneg %p1562_p1  ;;  %p1569_p6 = por %p1568_p13, %p1567_p4 }
  0x5c   : > { %p1570_p10 = pnand %p1569_p6, %p1563_p5 }
  0x5e   : > { %1573 = shalt.err (!%p1570_p10)
}
  0x5f   : > { %1404 = dma.hbm_to_vmem [thread:$0]  (!%p1865_p11), %s1861_s16, 2048, %s1863_s17, %s1869_s26, %s1680_s19, %s1680_s19, %s1681_s20  }
  0x60   : > { %262 = sbr.rel (%p1762_p8) target bundleno = 649 (0x289), region = 40  ;;  %s1903_s30 = sand.u32 (!%p1762_p8), 1, %s1668_s22  }
  0x61   : > { %s1186_s14 = sshll.u32 (!%p1762_p8), %s1903_s30, 7  ;;  %s265_s7 = scalar_lea.sflag (!%p1762_p8), [#allocation3], %s1903_s30 }
  0x62   : > { %s1907_s12 = scalar_lea.vmem (!%p1762_p8), [#allocation2], %s1186_s14  ;;  %p2190_p4 = scmp.ne.s32.totalorder (!%p1762_p8), %s2183_s27, 0 }
  0x67   : > { %1647 = dma.done.wait (%p2190_p4), %s265_s7, 2048  }
  0x68   : > { %1649 = vsyncadd (%p2190_p4), %s265_s7, 4294965248  ;;  %p2191_p5 = scmp.eq.s32.totalorder %s1743_s25, 0 }
  0x6a   : > { %1651 = dma.done.wait (%p2191_p5), [#allocation6], 2048   ;;  %p2192_p8 = pmov %p2191_p5 }
  0x6b   : > { %v1456_v0 = vld [vmem:[#allocation5] sm:$0xff]   ;;  %v1457_v1 = vld [vmem:[#allocation5 + $0x8] sm:$0xff]   ;;  %v1458_v2 = vld [vmem:[#allocation5 + $0x10] sm:$0xff]   ;;  %s1189_s19 = sshll.u32 %s1903_s30, 8  ;;  %s1234_s16 = sshll.u32 %s1743_s25, 12 }
  0x6c   : > { %1653 = vsyncadd (%p2192_p8), [#allocation6], 4294965248  ;;  %1284 = vmatprep.subr.bf16.mxu0 %v1456_v0  ;;  %v1459_v3 = vld [vmem:[#allocation5 + $0x18] sm:$0xff]   ;;  %v1464_v4 = vld [vmem:[%s1907_s12] sm:$0xff]   ;;  %s1945_s20 = scalar_lea.vmem [#allocation8], %s1189_s19  ;;  %s2014_s13 = scalar_lea.hbm %s2178_s5, %s1234_s16 }
  0x6d   : > { %1285 = vmatpush3.bf16.msra.mxu0 %v1456_v0  ;;  %1300 = vmatprep.mubr.bf16.mxu0 %v1464_v4  ;;  %v1460_v5 = vld [vmem:[#allocation5 + $0x20] sm:$0xff]   ;;  %v1461_v6 = vld [vmem:[#allocation5 + $0x28] sm:$0xff]   ;;  %v1462_v7 = vld [vmem:[#allocation5 + $0x30] sm:$0xff]   ;;  %s1037_s17 = sshll.u32 %s1945_s20, 4  ;;  %s1019_s10 = scalar_lea.sflag [#allocation4], %s1903_s30  ;;  %s2016_s17 = int_to_ptr.vmem [resolvable:$true] %s1037_s17 }
  0x6e   : > { %1286 = vmatprep.subr.bf16.mxu0 %v1457_v1  ;;  %v1463_v8 = vld [vmem:[#allocation5 + $0x38] sm:$0xff]   ;;  %v1480_v9 = vld [vmem:[#allocation7] sm:$0xff]   ;;  %v1481_v10 = vld [vmem:[#allocation7 + $0x8] sm:$0xff]   ;;  %s1574_s15 = scalar_lea.vmem %s2016_s17, 4096  ;;  %p2193_p0 = scmp.ne.s32.totalorder %s2188_s9, 0 }
  0x6f   : > { %1332 = vmatprep.subr.bf16.mxu1 %v1480_v9  ;;  %v1482_v11 = vld [vmem:[#allocation7 + $0x10] sm:$0xff]   ;;  %v1465_v12 = vld [vmem:[%s1907_s12 + $0x8] sm:$0xff]   ;;  %v1483_v14 = vld [vmem:[#allocation7 + $0x18] sm:$0xff]   ;;  %p1575_p11 = scmp.ne.s32.totalorder %s2016_s17, %s1574_s15  ;;  %s1683_s14 = smov [#allocation8]  }
  0x70   : > { %1333 = vmatpush3.bf16.msra.mxu1 %v1480_v9  ;;  %v1466_v13 = vld [vmem:[%s1907_s12 + $0x10] sm:$0xff]   ;;  %v1484_v15 = vld [vmem:[#allocation7 + $0x20] sm:$0xff]   ;;  %v1467_v16 = vld [vmem:[%s1907_s12 + $0x18] sm:$0xff]   ;;  %s1578_s7 = sshll.u32 %s1683_s14, 4  ;;  %s1579_s7 = int_to_ptr.vmem [resolvable:$false] %s1578_s7 }
  0x71   : > { %1287 = vmatpush3.bf16.msra.mxu0 %v1457_v1  ;;  %1334 = vmatprep.subr.bf16.mxu1 %v1481_v10  ;;  %v1468_v17 = vld [vmem:[%s1907_s12 + $0x20] sm:$0xff]   ;;  %v1485_v18 = vld [vmem:[#allocation7 + $0x28] sm:$0xff]   ;;  %v1470_v20 = vld [vmem:[%s1907_s12 + $0x30] sm:$0xff]   ;;  %p1576_p2 = pnand %p1575_p11, %p2193_p0  ;;  %p1581_p7 = scmp.lt.s32.totalorder %s2016_s17, %s1579_s7 }
  0x72   : > { %1288 = vmatprep.subr.bf16.mxu0 %v1458_v2  ;;  %v1469_v19 = vld [vmem:[%s1907_s12 + $0x28] sm:$0xff]   ;;  %v1471_v21 = vld [vmem:[%s1907_s12 + $0x38] sm:$0xff]   ;;  %v1472_v22 = vld [vmem:[%s1907_s12 + $0x40] sm:$0xff]  }
  0x73   : > { %v1473_v23 = vld [vmem:[%s1907_s12 + $0x48] sm:$0xff]   ;;  %v1474_v24 = vld [vmem:[%s1907_s12 + $0x50] sm:$0xff]   ;;  %v1475_v25 = vld [vmem:[%s1907_s12 + $0x58] sm:$0xff]   ;;  %p1577_p3 = pneg %p1576_p2 }
  0x74   : > { %1335 = vmatpush3.bf16.msra.mxu1 %v1481_v10  ;;  %v1476_v26 = vld [vmem:[%s1907_s12 + $0x60] sm:$0xff]   ;;  %v1477_v27 = vld [vmem:[%s1907_s12 + $0x68] sm:$0xff]   ;;  %v1478_v28 = vld [vmem:[%s1907_s12 + $0x70] sm:$0xff]  }
  0x75   : > { %1289 = vmatpush3.bf16.msra.mxu0 %v1458_v2  ;;  %1336 = vmatprep.subr.bf16.mxu1 %v1482_v11  ;;  %v1479_v29 = vld [vmem:[%s1907_s12 + $0x78] sm:$0xff]   ;;  %v1486_v30 = vld [vmem:[#allocation7 + $0x30] sm:$0xff]   ;;  %v1936_v32 = vld [vmem:[%s2175_s2] ss:$0 sm:$0xff]  ;;  %s1580_s12 = scalar_lea.vmem %s1579_s7, 8192 }
  0x76   : > { %1290 = vmatprep.subr.bf16.mxu0 %v1459_v3  ;;  %v1487_v31 = vld [vmem:[#allocation7 + $0x38] sm:$0xff]   ;;  %p1582_p9 = scmp.lt.s32.totalorder %s1580_s12, %s1574_s15 }
  0x78   : > { %1337 = vmatpush3.bf16.msra.mxu1 %v1482_v11  ;;  %p1583_p12 = por %p1582_p9, %p1581_p7 }
  0x79   : > { %1291 = vmatpush3.bf16.msra.mxu0 %v1459_v3  ;;  %1338 = vmatprep.subr.bf16.mxu1 %v1483_v14 }
  0x7a   : > { %1292 = vmatprep.subr.bf16.mxu0 %v1460_v5  ;;  %p1584_p1 = pnand %p1583_p12, %p1577_p3 }
  0x7c   : > { %1339 = vmatpush3.bf16.msra.mxu1 %v1483_v14 }
  0x7d   : > { %1293 = vmatpush3.bf16.msra.mxu0 %v1460_v5  ;;  %1340 = vmatprep.subr.bf16.mxu1 %v1484_v15 }
  0x7e   : > { %1294 = vmatprep.subr.bf16.mxu0 %v1461_v6 }
  0x80   : > { %1341 = vmatpush3.bf16.msra.mxu1 %v1484_v15 }
  0x81   : > { %1295 = vmatpush3.bf16.msra.mxu0 %v1461_v6  ;;  %1342 = vmatprep.subr.bf16.mxu1 %v1485_v18 }
  0x82   : > { %1296 = vmatprep.subr.bf16.mxu0 %v1462_v7 }
  0x84   : > { %1343 = vmatpush3.bf16.msra.mxu1 %v1485_v18 }
  0x85   : > { %1297 = vmatpush3.bf16.msra.mxu0 %v1462_v7  ;;  %1344 = vmatprep.subr.bf16.mxu1 %v1486_v30 }
  0x86   : > { %1298 = vmatprep.subr.bf16.mxu0 %v1463_v8 }
  0x88   : > { %1345 = vmatpush3.bf16.msra.mxu1 %v1486_v30 }
  0x89   : > { %1299 = vmatpush3.bf16.msra.mxu0 %v1463_v8  ;;  %1346 = vmatprep.subr.bf16.mxu1 %v1487_v31 }
  0x8c   : > { %1301 = vmatmul.mubr.bf16.vlgmr.msra.gmra.mrb[0].mxu0 %v1465_v12  ;;  %1347 = vmatpush3.bf16.msra.mxu1 %v1487_v31 }
  0x8d   : > { %1304 = vmatprep.mubr.bf16.mxu0 %v1466_v13 }
  0x94   : > { %1305 = vmatmul.mubr.bf16.gmra.mrb[4].mxu0 %v1467_v16 }
  0x95   : > { %1308 = vmatprep.mubr.bf16.mxu0 %v1468_v17 }
  0x9c   : > { %1309 = vmatmul.mubr.bf16.gmra.mrb[8].mxu0 %v1469_v19 }
  0x9d   : > { %1312 = vmatprep.mubr.bf16.mxu0 %v1470_v20 }
  0xa4   : > { %1313 = vmatmul.mubr.bf16.gmra.mrb[12].mxu0 %v1471_v21 }
  0xa5   : > { %1316 = vmatprep.mubr.bf16.mxu0 %v1472_v22 }
  0xac   : > { %1317 = vmatmul.mubr.bf16.gmra.mrb[16].mxu0 %v1473_v23 }
  0xad   : > { %1320 = vmatprep.mubr.bf16.mxu0 %v1474_v24 }
  0xb4   : > { %1321 = vmatmul.mubr.bf16.gmra.mrb[20].mxu0 %v1475_v25 }
  0xb5   : > { %1324 = vmatprep.mubr.bf16.mxu0 %v1476_v26 }
  0xbc   : > { %1325 = vmatmul.mubr.bf16.gmra.mrb[24].mxu0 %v1477_v27 }
  0xbd   : > { %1328 = vmatprep.mubr.bf16.mxu0 %v1478_v28 }
  0xc4   : > { %1329 = vmatmul.mubr.bf16.gmra.mrb[28].mxu0 %v1479_v29 }
 0x15f   : > { %v1302_v33 = vpop.f32.mrb[0].mxu0 }
 0x160   : > { %v556_v34 = vadd.f32 %v1302_v33, %v1936_v32  ;;  %v547_v35 = vpop.f32.mrb[1].mxu0 }
 0x161   : > { %v548_v36 = vadd.f32 %v1936_v32, %v547_v35  ;;  %v1303_v37 = vpop.f32.mrb[2].mxu0 }
 0x162   : > { %v676_v38 = vmax.f32 %v556_v34, 0.0  ;;  %v559_v39 = vadd.f32 %v1303_v37, %v1936_v32  ;;  %v550_v40 = vpop.f32.mrb[3].mxu0 }
 0x163   : > { %v674_v41 = vmax.f32 %v548_v36, 0.0  ;;  %v551_v42 = vadd.f32 %v1936_v32, %v550_v40 }
 0x164   : > { %708 = vst [vmem:[%s1945_s20 + $0x10] sm:$0xff] %v676_v38  ;;  %v677_v43 = vmax.f32 %v559_v39, 0.0 }
 0x165   : > { %706 = vst [vmem:[%s1945_s20] sm:$0xff] %v674_v41  ;;  %v675_v44 = vmax.f32 %v551_v42, 0.0 }
 0x166   : > { %709 = vst [vmem:[%s1945_s20 + $0x18] sm:$0xff] %v677_v43  ;;  %v739_v45 = vpack.c.bf16 %v677_v43, %v676_v38 }
 0x167   : > { %707 = vst [vmem:[%s1945_s20 + $0x8] sm:$0xff] %v675_v44  ;;  %v1306_v46 = vpop.f32.mrb[4].mxu0  ;;  %v738_v47 = vpack.c.bf16 %v675_v44, %v674_v41 }
 0x168   : > { %v572_v48 = vadd.f32 %v1306_v46, %v1936_v32  ;;  %v563_v49 = vpop.f32.mrb[5].mxu0 }
 0x169   : > { %v564_v50 = vadd.f32 %v1936_v32, %v563_v49  ;;  %v1307_v51 = vpop.f32.mrb[6].mxu0  ;;  %1348 = vmatprep.mubr.bf16.mxu1 %v738_v47 }
 0x16a   : > { %v680_v52 = vmax.f32 %v572_v48, 0.0  ;;  %v575_v53 = vadd.f32 %v1307_v51, %v1936_v32  ;;  %v566_v54 = vpop.f32.mrb[7].mxu0  ;;  %1349 = vmatmul.mubr.bf16.vlgmr.msra.gmra.mrb[0].mxu1 %v739_v45 }
 0x16b   : > { %v678_v55 = vmax.f32 %v564_v50, 0.0  ;;  %v567_v56 = vadd.f32 %v1936_v32, %v566_v54 }
 0x16c   : > { %712 = vst [vmem:[%s1945_s20 + $0x30] sm:$0xff] %v680_v52  ;;  %v681_v57 = vmax.f32 %v575_v53, 0.0 }
 0x16d   : > { %710 = vst [vmem:[%s1945_s20 + $0x20] sm:$0xff] %v678_v55  ;;  %v679_v58 = vmax.f32 %v567_v56, 0.0 }
 0x16e   : > { %713 = vst [vmem:[%s1945_s20 + $0x38] sm:$0xff] %v681_v57  ;;  %v741_v59 = vpack.c.bf16 %v681_v57, %v680_v52 }
 0x16f   : > { %711 = vst [vmem:[%s1945_s20 + $0x28] sm:$0xff] %v679_v58  ;;  %v740_v60 = vpack.c.bf16 %v679_v58, %v678_v55  ;;  %v1310_v61 = vpop.f32.mrb[8].mxu0 }
 0x170   : > { %v588_v62 = vadd.f32 %v1310_v61, %v1936_v32  ;;  %v579_v63 = vpop.f32.mrb[9].mxu0 }
 0x171   : > { %v580_v0 = vadd.f32 %v1936_v32, %v579_v63  ;;  %v1311_v1 = vpop.f32.mrb[10].mxu0  ;;  %1352 = vmatprep.mubr.bf16.mxu1 %v740_v60 }
 0x172   : > { %v684_v2 = vmax.f32 %v588_v62, 0.0  ;;  %v591_v3 = vadd.f32 %v1311_v1, %v1936_v32  ;;  %v582_v4 = vpop.f32.mrb[11].mxu0  ;;  %1353 = vmatmul.mubr.bf16.gmra.mrb[4].mxu1 %v741_v59 }
 0x173   : > { %v682_v5 = vmax.f32 %v580_v0, 0.0  ;;  %v583_v6 = vadd.f32 %v1936_v32, %v582_v4 }
 0x174   : > { %716 = vst [vmem:[%s1945_s20 + $0x50] sm:$0xff] %v684_v2  ;;  %v685_v7 = vmax.f32 %v591_v3, 0.0 }
 0x175   : > { %714 = vst [vmem:[%s1945_s20 + $0x40] sm:$0xff] %v682_v5  ;;  %v683_v8 = vmax.f32 %v583_v6, 0.0 }
 0x176   : > { %717 = vst [vmem:[%s1945_s20 + $0x58] sm:$0xff] %v685_v7  ;;  %v743_v9 = vpack.c.bf16 %v685_v7, %v684_v2 }
 0x177   : > { %715 = vst [vmem:[%s1945_s20 + $0x48] sm:$0xff] %v683_v8  ;;  %v742_v10 = vpack.c.bf16 %v683_v8, %v682_v5  ;;  %v1314_v11 = vpop.f32.mrb[12].mxu0 }
 0x178   : > { %v604_v12 = vadd.f32 %v1314_v11, %v1936_v32  ;;  %v595_v13 = vpop.f32.mrb[13].mxu0 }
 0x179   : > { %v596_v14 = vadd.f32 %v1936_v32, %v595_v13  ;;  %v1315_v15 = vpop.f32.mrb[14].mxu0  ;;  %1356 = vmatprep.mubr.bf16.mxu1 %v742_v10 }
 0x17a   : > { %v688_v16 = vmax.f32 %v604_v12, 0.0  ;;  %v607_v17 = vadd.f32 %v1315_v15, %v1936_v32  ;;  %v598_v18 = vpop.f32.mrb[15].mxu0  ;;  %1357 = vmatmul.mubr.bf16.gmra.mrb[8].mxu1 %v743_v9 }
 0x17b   : > { %v686_v19 = vmax.f32 %v596_v14, 0.0  ;;  %v599_v20 = vadd.f32 %v1936_v32, %v598_v18 }
 0x17c   : > { %720 = vst [vmem:[%s1945_s20 + $0x70] sm:$0xff] %v688_v16  ;;  %v689_v21 = vmax.f32 %v607_v17, 0.0 }
 0x17d   : > { %718 = vst [vmem:[%s1945_s20 + $0x60] sm:$0xff] %v686_v19  ;;  %v687_v22 = vmax.f32 %v599_v20, 0.0 }
 0x17e   : > { %721 = vst [vmem:[%s1945_s20 + $0x78] sm:$0xff] %v689_v21  ;;  %v745_v23 = vpack.c.bf16 %v689_v21, %v688_v16 }
 0x17f   : > { %719 = vst [vmem:[%s1945_s20 + $0x68] sm:$0xff] %v687_v22  ;;  %v744_v24 = vpack.c.bf16 %v687_v22, %v686_v19  ;;  %v1318_v25 = vpop.f32.mrb[16].mxu0 }
 0x180   : > { %v620_v26 = vadd.f32 %v1318_v25, %v1936_v32  ;;  %v611_v27 = vpop.f32.mrb[17].mxu0 }
 0x181   : > { %v612_v28 = vadd.f32 %v1936_v32, %v611_v27  ;;  %v1319_v29 = vpop.f32.mrb[18].mxu0  ;;  %1360 = vmatprep.mubr.bf16.mxu1 %v744_v24 }
 0x182   : > { %v692_v30 = vmax.f32 %v620_v26, 0.0  ;;  %v623_v31 = vadd.f32 %v1319_v29, %v1936_v32  ;;  %v614_v33 = vpop.f32.mrb[19].mxu0  ;;  %1361 = vmatmul.mubr.bf16.gmra.mrb[12].mxu1 %v745_v23 }
 0x183   : > { %v690_v34 = vmax.f32 %v612_v28, 0.0  ;;  %v615_v35 = vadd.f32 %v1936_v32, %v614_v33 }
 0x184   : > { %724 = vst [vmem:[%s1945_s20 + $0x90] sm:$0xff] %v692_v30  ;;  %v693_v36 = vmax.f32 %v623_v31, 0.0 }
 0x185   : > { %722 = vst [vmem:[%s1945_s20 + $0x80] sm:$0xff] %v690_v34  ;;  %v691_v37 = vmax.f32 %v615_v35, 0.0 }
 0x186   : > { %725 = vst [vmem:[%s1945_s20 + $0x98] sm:$0xff] %v693_v36  ;;  %v747_v38 = vpack.c.bf16 %v693_v36, %v692_v30 }
 0x187   : > { %723 = vst [vmem:[%s1945_s20 + $0x88] sm:$0xff] %v691_v37  ;;  %v746_v39 = vpack.c.bf16 %v691_v37, %v690_v34  ;;  %v1322_v40 = vpop.f32.mrb[20].mxu0 }
 0x188   : > { %v636_v41 = vadd.f32 %v1322_v40, %v1936_v32  ;;  %v627_v42 = vpop.f32.mrb[21].mxu0 }
 0x189   : > { %v628_v43 = vadd.f32 %v1936_v32, %v627_v42  ;;  %v1323_v44 = vpop.f32.mrb[22].mxu0  ;;  %1364 = vmatprep.mubr.bf16.mxu1 %v746_v39 }
 0x18a   : > { %v696_v45 = vmax.f32 %v636_v41, 0.0  ;;  %v639_v46 = vadd.f32 %v1323_v44, %v1936_v32  ;;  %v630_v47 = vpop.f32.mrb[23].mxu0  ;;  %1365 = vmatmul.mubr.bf16.gmra.mrb[16].mxu1 %v747_v38 }
 0x18b   : > { %v694_v48 = vmax.f32 %v628_v43, 0.0  ;;  %v631_v49 = vadd.f32 %v1936_v32, %v630_v47 }
 0x18c   : > { %728 = vst [vmem:[%s1945_s20 + $0xb0] sm:$0xff] %v696_v45  ;;  %v697_v50 = vmax.f32 %v639_v46, 0.0 }
 0x18d   : > { %726 = vst [vmem:[%s1945_s20 + $0xa0] sm:$0xff] %v694_v48  ;;  %v695_v51 = vmax.f32 %v631_v49, 0.0 }
 0x18e   : > { %729 = vst [vmem:[%s1945_s20 + $0xb8] sm:$0xff] %v697_v50  ;;  %v749_v52 = vpack.c.bf16 %v697_v50, %v696_v45 }
 0x18f   : > { %727 = vst [vmem:[%s1945_s20 + $0xa8] sm:$0xff] %v695_v51  ;;  %v748_v53 = vpack.c.bf16 %v695_v51, %v694_v48  ;;  %v1326_v54 = vpop.f32.mrb[24].mxu0 }
 0x190   : > { %v652_v55 = vadd.f32 %v1326_v54, %v1936_v32  ;;  %v643_v56 = vpop.f32.mrb[25].mxu0 }
 0x191   : > { %v644_v57 = vadd.f32 %v1936_v32, %v643_v56  ;;  %v1327_v58 = vpop.f32.mrb[26].mxu0  ;;  %1368 = vmatprep.mubr.bf16.mxu1 %v748_v53 }
 0x192   : > { %v700_v59 = vmax.f32 %v652_v55, 0.0  ;;  %v655_v60 = vadd.f32 %v1327_v58, %v1936_v32  ;;  %v646_v61 = vpop.f32.mrb[27].mxu0  ;;  %1369 = vmatmul.mubr.bf16.gmra.mrb[20].mxu1 %v749_v52 }
 0x193   : > { %v698_v62 = vmax.f32 %v644_v57, 0.0  ;;  %v647_v63 = vadd.f32 %v1936_v32, %v646_v61 }
 0x194   : > { %732 = vst [vmem:[%s1945_s20 + $0xd0] sm:$0xff] %v700_v59  ;;  %v701_v0 = vmax.f32 %v655_v60, 0.0 }
 0x195   : > { %730 = vst [vmem:[%s1945_s20 + $0xc0] sm:$0xff] %v698_v62  ;;  %v699_v1 = vmax.f32 %v647_v63, 0.0 }
 0x196   : > { %733 = vst [vmem:[%s1945_s20 + $0xd8] sm:$0xff] %v701_v0  ;;  %v751_v2 = vpack.c.bf16 %v701_v0, %v700_v59 }
 0x197   : > { %731 = vst [vmem:[%s1945_s20 + $0xc8] sm:$0xff] %v699_v1  ;;  %v750_v3 = vpack.c.bf16 %v699_v1, %v698_v62  ;;  %v1330_v4 = vpop.f32.mrb[28].mxu0 }
 0x198   : > { %v668_v5 = vadd.f32 %v1330_v4, %v1936_v32  ;;  %v659_v6 = vpop.f32.mrb[29].mxu0 }
 0x199   : > { %v660_v7 = vadd.f32 %v1936_v32, %v659_v6  ;;  %v1331_v8 = vpop.f32.mrb[30].mxu0  ;;  %1372 = vmatprep.mubr.bf16.mxu1 %v750_v3 }
 0x19a   : > { %v704_v9 = vmax.f32 %v668_v5, 0.0  ;;  %v671_v10 = vadd.f32 %v1331_v8, %v1936_v32  ;;  %v662_v11 = vpop.f32.mrb[31].mxu0  ;;  %1373 = vmatmul.mubr.bf16.gmra.mrb[24].mxu1 %v751_v2 }
 0x19b   : > { %v702_v12 = vmax.f32 %v660_v7, 0.0  ;;  %v663_v13 = vadd.f32 %v1936_v32, %v662_v11 }
 0x19c   : > { %736 = vst [vmem:[%s1945_s20 + $0xf0] sm:$0xff] %v704_v9  ;;  %v705_v14 = vmax.f32 %v671_v10, 0.0 }
 0x19d   : > { %734 = vst [vmem:[%s1945_s20 + $0xe0] sm:$0xff] %v702_v12  ;;  %v703_v15 = vmax.f32 %v663_v13, 0.0 }
 0x19e   : > { %737 = vst [vmem:[%s1945_s20 + $0xf8] sm:$0xff] %v705_v14  ;;  %v753_v16 = vpack.c.bf16 %v705_v14, %v704_v9 }
 0x19f   : > { %735 = vst [vmem:[%s1945_s20 + $0xe8] sm:$0xff] %v703_v15  ;;  %v752_v17 = vpack.c.bf16 %v703_v15, %v702_v12 }
 0x1a1   : > { %1376 = vmatprep.mubr.bf16.mxu1 %v752_v17 }
 0x1a2   : > { %1377 = vmatmul.mubr.bf16.gmra.mrb[28].mxu1 %v753_v16 }
 0x1a3   : > { %1587 = shalt.err (!%p1584_p1)
}
 0x1a4   : > { %s1588_s27 = scalar_lea.hbm %s2014_s13, 4096  ;;  %s1592_s18 = scalar_lea.hbm %s2178_s5, 8192 }
 0x1a5   : > { %p1589_p13 = scmp.ne.s32.totalorder %s2014_s13, %s1588_s27  ;;  %p1593_p4 = scmp.lt.u32.totalorder %s2014_s13, %s2178_s5 }
 0x1a6   : > { %p1594_p5 = scmp.lt.u32.totalorder %s1592_s18, %s1588_s27  ;;  %p1596_p11 = scmp.lt.u32.totalorder %s1588_s27, %s2014_s13 }
 0x1a7   : > { %p1590_p6 = pnand %p1589_p13, %p2193_p0 }
 0x1a8   : > { %p1595_p8 = por %p1594_p5, %p1593_p4 }
 0x1a9   : > { %p1591_p10 = pneg %p1590_p6 }
 0x1aa   : > { %p1597_p2 = por %p1596_p11, %p1595_p8 }
 0x1ac   : > { %p1598_p3 = pnand %p1597_p2, %p1591_p10 }
 0x1ae   : > { %1601 = shalt.err (!%p1598_p3)
}
 0x1af   : > { %s1684_s15 = smov 128   ;;  %s1685_s7 = smov 8   ;;  %v2048_v32 = vld [vmem:[%s2177_s4] ss:$0 sm:$0xff] }
 0x1b0   : > { %1390 = dma.vmem_to_hbm [thread:$0]  (%p2193_p0), %s2016_s17, 4096, %s2014_s13, %s1019_s10, %s1684_s15, %s1684_s15, %s1685_s7  }
 0x1b1   : > { %s2054_s27 = scalar_lea.vmem [#allocation9], %s1189_s19  ;;  %s2122_s10 = scalar_lea.hbm %s2179_s6, %s1234_s16 }
 0x1b2   : > { %s1053_s19 = sshll.u32 %s2054_s27, 4  ;;  %s1024_s20 = scalar_lea.sflag [#allocation10], %s1903_s30  ;;  %s2124_s19 = int_to_ptr.vmem [resolvable:$true] %s1053_s19 }
 0x1b3   : > { %s1602_s18 = scalar_lea.vmem %s2124_s19, 4096  ;;  %s1686_s26 = smov [#allocation9]  }
 0x1b4   : > { %p1603_p7 = scmp.ne.s32.totalorder %s2124_s19, %s1602_s18  ;;  %s1606_s25 = sshll.u32 %s1686_s26, 4  ;;  %s1607_s25 = int_to_ptr.vmem [resolvable:$false] %s1606_s25 }
 0x1b5   : > { %s1608_s14 = scalar_lea.vmem %s1607_s25, 8192  ;;  %p1609_p1 = scmp.lt.s32.totalorder %s2124_s19, %s1607_s25 }
 0x1b6   : > { %p1604_p9 = pnand %p1603_p7, %p2193_p0  ;;  %p1610_p13 = scmp.lt.s32.totalorder %s1608_s14, %s1602_s18 }
 0x1b8   : > { %p1605_p12 = pneg %p1604_p9  ;;  %p1611_p6 = por %p1610_p13, %p1609_p1 }
 0x1ba   : > { %p1612_p10 = pnand %p1611_p6, %p1605_p12 }
 0x23d   : > { %v1350_v18 = vpop.f32.mrb[0].mxu1 }
 0x23e   : > { %v868_v19 = vadd.f32 %v1350_v18, %v2048_v32  ;;  %v859_v20 = vpop.f32.mrb[1].mxu1 }
 0x23f   : > { %v860_v21 = vadd.f32 %v2048_v32, %v859_v20  ;;  %v1351_v22 = vpop.f32.mrb[2].mxu1 }
 0x240   : > { %988 = vst [vmem:[%s2054_s27 + $0x10] sm:$0xff] %v868_v19  ;;  %v871_v23 = vadd.f32 %v1351_v22, %v2048_v32  ;;  %v862_v24 = vpop.f32.mrb[3].mxu1 }
 0x241   : > { %986 = vst [vmem:[%s2054_s27] sm:$0xff] %v860_v21  ;;  %v863_v25 = vadd.f32 %v2048_v32, %v862_v24 }
 0x242   : > { %989 = vst [vmem:[%s2054_s27 + $0x18] sm:$0xff] %v871_v23 }
 0x243   : > { %987 = vst [vmem:[%s2054_s27 + $0x8] sm:$0xff] %v863_v25 }
 0x245   : > { %v1354_v26 = vpop.f32.mrb[4].mxu1 }
 0x246   : > { %v884_v27 = vadd.f32 %v1354_v26, %v2048_v32  ;;  %v875_v28 = vpop.f32.mrb[5].mxu1 }
 0x247   : > { %v876_v29 = vadd.f32 %v2048_v32, %v875_v28  ;;  %v1355_v30 = vpop.f32.mrb[6].mxu1 }
 0x248   : > { %992 = vst [vmem:[%s2054_s27 + $0x30] sm:$0xff] %v884_v27  ;;  %v887_v31 = vadd.f32 %v1355_v30, %v2048_v32  ;;  %v878_v33 = vpop.f32.mrb[7].mxu1 }
 0x249   : > { %990 = vst [vmem:[%s2054_s27 + $0x20] sm:$0xff] %v876_v29  ;;  %v879_v34 = vadd.f32 %v2048_v32, %v878_v33 }
 0x24a   : > { %993 = vst [vmem:[%s2054_s27 + $0x38] sm:$0xff] %v887_v31 }
 0x24b   : > { %991 = vst [vmem:[%s2054_s27 + $0x28] sm:$0xff] %v879_v34 }
 0x24d   : > { %v1358_v35 = vpop.f32.mrb[8].mxu1 }
 0x24e   : > { %v900_v36 = vadd.f32 %v1358_v35, %v2048_v32  ;;  %v891_v37 = vpop.f32.mrb[9].mxu1 }
 0x24f   : > { %v892_v38 = vadd.f32 %v2048_v32, %v891_v37  ;;  %v1359_v39 = vpop.f32.mrb[10].mxu1 }
 0x250   : > { %996 = vst [vmem:[%s2054_s27 + $0x50] sm:$0xff] %v900_v36  ;;  %v903_v40 = vadd.f32 %v1359_v39, %v2048_v32  ;;  %v894_v41 = vpop.f32.mrb[11].mxu1 }
 0x251   : > { %994 = vst [vmem:[%s2054_s27 + $0x40] sm:$0xff] %v892_v38  ;;  %v895_v42 = vadd.f32 %v2048_v32, %v894_v41 }
 0x252   : > { %997 = vst [vmem:[%s2054_s27 + $0x58] sm:$0xff] %v903_v40 }
 0x253   : > { %995 = vst [vmem:[%s2054_s27 + $0x48] sm:$0xff] %v895_v42 }
 0x255   : > { %v1362_v43 = vpop.f32.mrb[12].mxu1 }
 0x256   : > { %v916_v44 = vadd.f32 %v1362_v43, %v2048_v32  ;;  %v907_v45 = vpop.f32.mrb[13].mxu1 }
 0x257   : > { %v908_v46 = vadd.f32 %v2048_v32, %v907_v45  ;;  %v1363_v47 = vpop.f32.mrb[14].mxu1 }
 0x258   : > { %1000 = vst [vmem:[%s2054_s27 + $0x70] sm:$0xff] %v916_v44  ;;  %v919_v48 = vadd.f32 %v1363_v47, %v2048_v32  ;;  %v910_v49 = vpop.f32.mrb[15].mxu1 }
 0x259   : > { %998 = vst [vmem:[%s2054_s27 + $0x60] sm:$0xff] %v908_v46  ;;  %v911_v50 = vadd.f32 %v2048_v32, %v910_v49 }
 0x25a   : > { %1001 = vst [vmem:[%s2054_s27 + $0x78] sm:$0xff] %v919_v48 }
 0x25b   : > { %999 = vst [vmem:[%s2054_s27 + $0x68] sm:$0xff] %v911_v50 }
 0x25d   : > { %v1366_v51 = vpop.f32.mrb[16].mxu1 }
 0x25e   : > { %v932_v52 = vadd.f32 %v1366_v51, %v2048_v32  ;;  %v923_v53 = vpop.f32.mrb[17].mxu1 }
 0x25f   : > { %v924_v54 = vadd.f32 %v2048_v32, %v923_v53  ;;  %v1367_v55 = vpop.f32.mrb[18].mxu1 }
 0x260   : > { %1004 = vst [vmem:[%s2054_s27 + $0x90] sm:$0xff] %v932_v52  ;;  %v935_v56 = vadd.f32 %v1367_v55, %v2048_v32  ;;  %v926_v57 = vpop.f32.mrb[19].mxu1 }
 0x261   : > { %1002 = vst [vmem:[%s2054_s27 + $0x80] sm:$0xff] %v924_v54  ;;  %v927_v58 = vadd.f32 %v2048_v32, %v926_v57 }
 0x262   : > { %1005 = vst [vmem:[%s2054_s27 + $0x98] sm:$0xff] %v935_v56 }
 0x263   : > { %1003 = vst [vmem:[%s2054_s27 + $0x88] sm:$0xff] %v927_v58 }
 0x265   : > { %v1370_v59 = vpop.f32.mrb[20].mxu1 }
 0x266   : > { %v948_v60 = vadd.f32 %v1370_v59, %v2048_v32  ;;  %v939_v61 = vpop.f32.mrb[21].mxu1 }
 0x267   : > { %v940_v62 = vadd.f32 %v2048_v32, %v939_v61  ;;  %v1371_v63 = vpop.f32.mrb[22].mxu1 }
 0x268   : > { %1008 = vst [vmem:[%s2054_s27 + $0xb0] sm:$0xff] %v948_v60  ;;  %v951_v0 = vadd.f32 %v1371_v63, %v2048_v32  ;;  %v942_v1 = vpop.f32.mrb[23].mxu1 }
 0x269   : > { %1006 = vst [vmem:[%s2054_s27 + $0xa0] sm:$0xff] %v940_v62  ;;  %v943_v2 = vadd.f32 %v2048_v32, %v942_v1 }
 0x26a   : > { %1009 = vst [vmem:[%s2054_s27 + $0xb8] sm:$0xff] %v951_v0 }
 0x26b   : > { %1007 = vst [vmem:[%s2054_s27 + $0xa8] sm:$0xff] %v943_v2 }
 0x26d   : > { %v1374_v3 = vpop.f32.mrb[24].mxu1 }
 0x26e   : > { %v964_v4 = vadd.f32 %v1374_v3, %v2048_v32  ;;  %v955_v5 = vpop.f32.mrb[25].mxu1 }
 0x26f   : > { %v956_v6 = vadd.f32 %v2048_v32, %v955_v5  ;;  %v1375_v7 = vpop.f32.mrb[26].mxu1 }
 0x270   : > { %1012 = vst [vmem:[%s2054_s27 + $0xd0] sm:$0xff] %v964_v4  ;;  %v967_v8 = vadd.f32 %v1375_v7, %v2048_v32  ;;  %v958_v9 = vpop.f32.mrb[27].mxu1 }
 0x271   : > { %1010 = vst [vmem:[%s2054_s27 + $0xc0] sm:$0xff] %v956_v6  ;;  %v959_v10 = vadd.f32 %v2048_v32, %v958_v9 }
 0x272   : > { %1013 = vst [vmem:[%s2054_s27 + $0xd8] sm:$0xff] %v967_v8 }
 0x273   : > { %1011 = vst [vmem:[%s2054_s27 + $0xc8] sm:$0xff] %v959_v10 }
 0x275   : > { %v1378_v11 = vpop.f32.mrb[28].mxu1 }
 0x276   : > { %v980_v12 = vadd.f32 %v1378_v11, %v2048_v32  ;;  %v971_v13 = vpop.f32.mrb[29].mxu1 }
 0x277   : > { %v972_v14 = vadd.f32 %v2048_v32, %v971_v13  ;;  %v1379_v15 = vpop.f32.mrb[30].mxu1 }
 0x278   : > { %1016 = vst [vmem:[%s2054_s27 + $0xf0] sm:$0xff] %v980_v12  ;;  %v983_v16 = vadd.f32 %v1379_v15, %v2048_v32  ;;  %v974_v17 = vpop.f32.mrb[31].mxu1 }
 0x279   : > { %1014 = vst [vmem:[%s2054_s27 + $0xe0] sm:$0xff] %v972_v14  ;;  %v975_v18 = vadd.f32 %v2048_v32, %v974_v17 }
 0x27a   : > { %1017 = vst [vmem:[%s2054_s27 + $0xf8] sm:$0xff] %v983_v16 }
 0x27b   : > { %1015 = vst [vmem:[%s2054_s27 + $0xe8] sm:$0xff] %v975_v18 }
 0x27c   : > { %1615 = shalt.err (!%p1612_p10)
}
 0x27d   : > { %s1616_s16 = scalar_lea.hbm %s2122_s10, 4096  ;;  %s1620_s27 = scalar_lea.hbm %s2179_s6, 8192 }
 0x27e   : > { %p1617_p4 = scmp.ne.s32.totalorder %s2122_s10, %s1616_s16  ;;  %p1621_p11 = scmp.lt.u32.totalorder %s2122_s10, %s2179_s6 }
 0x27f   : > { %p1622_p2 = scmp.lt.u32.totalorder %s1620_s27, %s1616_s16  ;;  %p1624_p7 = scmp.lt.u32.totalorder %s1616_s16, %s2122_s10 }
 0x280   : > { %p1618_p5 = pnand %p1617_p4, %p2193_p0 }
 0x281   : > { %p1623_p3 = por %p1622_p2, %p1621_p11 }
 0x282   : > { %p1619_p8 = pneg %p1618_p5 }
 0x283   : > { %p1625_p9 = por %p1624_p7, %p1623_p3 }
 0x285   : > { %p1626_p12 = pnand %p1625_p9, %p1619_p8 }
 0x287   : > { %1629 = shalt.err (!%p1626_p12)
}
 0x288   : > { %1391 = dma.vmem_to_hbm [thread:$0]  (%p2193_p0), %s2124_s19, 4096, %s2122_s10, %s1024_s20, %s1684_s15, %s1684_s15, %s1685_s7  }
 0x289 PF: > { %s1068_s18 = sand.u32 1, %s1664_s21   ;;  %p2194_p1 = scmp.ne.s32.totalorder %s2184_s28, 0 }
 0x28a   : > { %p2195_p13 = scmp.ge.s32.totalorder %s1676_s24, 2  ;;  %s1069_s26 = scalar_lea.sflag [#allocation4], %s1068_s18 }
 0x28c   : > { %p1406_p6 = pnand %p2195_p13, %p2194_p1 }
 0x28e   : > { %1655 = dma.done.wait (!%p1406_p6), %s1069_s26, 4096  }
 0x28f   : > { %1657 = vsyncadd (!%p1406_p6), %s1069_s26, 4294963200  ;;  %s1078_s9 = scalar_lea.sflag [#allocation10], %s1068_s18 }
 0x290   : > { %1659 = dma.done.wait (!%p1406_p6), %s1078_s9, 4096  }
 0x291   : > { %1661 = vsyncadd (!%p1406_p6), %s1078_s9, 4294963200  ;;  %p24_p0 = scmp.ge.s32.totalorder %s1838_s8, 4   ;;  %s2196_s21 = smov %s1668_s22 }
 0x292   : > { %s2197_s22 = smov %s1672_s23  ;;  %s2198_s23 = smov %s1854_s11 }
 0x293   : > { %s2199_s24 = smov %s1838_s8  ;;  %26 = sbr.rel (!%p24_p0) target bundleno = 8 (0x8), region = 110 }
 0x29a   :  { %1083 = vsyncpa [#allocation3], 1 }
 0x29b   :  { %1085 = vsyncpa [#allocation3 + $0x1], 1 }
 0x29c   :  { %1086 = vsyncpa [#allocation6], 1 }
 0x29d   :  { %1087 = vsyncpa [#allocation4], 1 }
 0x29e   :  { %1089 = vsyncpa [#allocation4 + $0x1], 1 }
 0x29f   :  { %1090 = vsyncpa [#allocation10], 1 }
 0x2a0   :  { %1092 = vsyncpa [#allocation10 + $0x1], 1 }

</bundles_post_ra>
